<compile_context>
chip_gen: v7x
topology: tpu7x:2x2x1
jax: 0.10.0
libtpu: 0.0.40
codegen_flags: <defaults>
</compile_context>

<pallas_src>
import functools

import jax
import jax.numpy as jnp
from jax import lax
from jax.experimental import pallas as pl
from jax.experimental.pallas import tpu as pltpu

LN_EPS = 1e-5


# -----------------------------------------------------------------------------
# Fused kernel: 4 x (Linear -> LayerNorm -> ReLU), sum over T, decode.
# One grid step == one batch element; x_ref is (T, D), out_ref is (1, C_pad).
# -----------------------------------------------------------------------------
def mlp_kernel(x_ref,
               w0_ref, g0_ref, b0_ref,
               w1_ref, g1_ref, b1_ref,
               w2_ref, g2_ref, b2_ref,
               w3_ref, g3_ref, b3_ref,
               wd_ref, out_ref, *, K):
    inv_k = 1.0 / K

    def ln_relu(h, g, b):
        mu = jnp.sum(h, axis=-1, keepdims=True) * inv_k
        hc = h - mu
        var = jnp.sum(hc * hc, axis=-1, keepdims=True) * inv_k
        y = hc * lax.rsqrt(var + LN_EPS) * g + b
        return jnp.maximum(y, 0.0)

    h = jnp.dot(x_ref[...], w0_ref[...], preferred_element_type=jnp.float32)
    h = ln_relu(h, g0_ref[...], b0_ref[...])
    h = jnp.dot(h, w1_ref[...], preferred_element_type=jnp.float32)
    h = ln_relu(h, g1_ref[...], b1_ref[...])
    h = jnp.dot(h, w2_ref[...], preferred_element_type=jnp.float32)
    h = ln_relu(h, g2_ref[...], b2_ref[...])
    h = jnp.dot(h, w3_ref[...], preferred_element_type=jnp.float32)
    h = ln_relu(h, g3_ref[...], b3_ref[...])

    # decode has no bias => decode(embed).sum(-2) == decode(embed.sum(-2))
    hsum = jnp.sum(h, axis=0, keepdims=True)                       # (1, K)
    out_ref[...] = jnp.dot(hsum, wd_ref[...],
                           preferred_element_type=jnp.float32)     # (1, C_pad)


# -----------------------------------------------------------------------------
# Wrapper: lane-padding of the decode weight, grid over batch, slice back.
# -----------------------------------------------------------------------------
def mlp_forward(x, params, n_class):
    B, T, D = x.shape
    K = params["w0"].shape[1]
    C_pad = max(128, ((n_class + 127) // 128) * 128)

    wd_pad = jnp.zeros((K, C_pad), jnp.float32).at[:, :n_class].set(params["wd"])

    full = lambda b: (0, 0)
    w_spec = lambda shape: pl.BlockSpec(shape, full)

    out = pl.pallas_call(
        functools.partial(mlp_kernel, K=K),
        out_shape=jax.ShapeDtypeStruct((B, 1, C_pad), jnp.float32),
        grid=(B,),
        in_specs=[
            pl.BlockSpec((None, T, D), lambda b: (b, 0, 0)),   # x: one batch / step
            w_spec((D, K)), w_spec((1, K)), w_spec((1, K)),    # layer 0
            w_spec((K, K)), w_spec((1, K)), w_spec((1, K)),    # layer 1
            w_spec((K, K)), w_spec((1, K)), w_spec((1, K)),    # layer 2
            w_spec((K, K)), w_spec((1, K)), w_spec((1, K)),    # layer 3
            w_spec((K, C_pad)),                                # decode (lane-padded)
        ],
        out_specs=pl.BlockSpec((None, 1, C_pad), lambda b: (b, 0, 0)),
        compiler_params=pltpu.CompilerParams(
            dimension_semantics=("parallel",)),                # both TCs on v7x
    )(x,
      params["w0"], params["g0"], params["b0"],
      params["w1"], params["g1"], params["b1"],
      params["w2"], params["g2"], params["b2"],
      params["w3"], params["g3"], params["b3"],
      wd_pad)

    return out.reshape(B, C_pad)[:, :n_class]


# -----------------------------------------------------------------------------
# Pure-JAX reference (faithful to the PyTorch op order: decode then sum(-2)).
# -----------------------------------------------------------------------------
def mlp_reference(x, params):
    h = x
    for i, w in enumerate([params["w0"], params["w1"], params["w2"], params["w3"]]):
        h = h @ w
        mu = jnp.mean(h, axis=-1, keepdims=True)
        var = jnp.mean((h - mu) ** 2, axis=-1, keepdims=True)
        h = (h - mu) / jnp.sqrt(var + LN_EPS) * params[f"g{i}"] + params[f"b{i}"]
        h = jnp.maximum(h, 0.0)
    return (h @ params["wd"]).sum(-2)


# -----------------------------------------------------------------------------
# Parameter init (shapes follow the PyTorch module __init__; LN affine = 1/0).
# -----------------------------------------------------------------------------
def init_params(key, D, K, C):
    ks = jax.random.split(key, 5)

    def u(k, shape, fan_in):
        bound = 1.0 / (fan_in ** 0.5)
        return jax.random.uniform(k, shape, jnp.float32, -bound, bound)

    p = {
        "w0": u(ks[0], (D, K), D),     # Linear(D, K, bias=False), stored (in, out)
        "w1": u(ks[1], (K, K), K),
        "w2": u(ks[2], (K, K), K),
        "w3": u(ks[3], (K, K), K),
        "wd": u(ks[4], (K, C), K),     # decode Linear(K, C, bias=False)
    }
    for i in range(4):                 # PyTorch LayerNorm default affine init
        p[f"g{i}"] = jnp.ones((1, K), jnp.float32)
        p[f"b{i}"] = jnp.zeros((1, K), jnp.float32)
    return p


if __name__ == "__main__":
    B, T, D = 2, 16, 80                # batch, seq, input_size (module default 80)
    K, C = 32, 65                      # embedding_dim, n_class (module default 65)

    key = jax.random.PRNGKey(0)
    k_par, k_x = jax.random.split(key)

    params = init_params(k_par, D, K, C)
    x = jax.random.normal(k_x, (B, T, D), jnp.float32)

    out = mlp_forward(x, params, n_class=C)
    out = jax.block_until_ready(out)

    ref = mlp_reference(x, params)

    assert out.shape == (B, C), out.shape
    assert bool(jnp.all(jnp.isfinite(out)))
    assert bool(jnp.allclose(out, ref, rtol=5e-3, atol=5e-3)), (
        float(jnp.max(jnp.abs(out - ref))))
    print("KERNEL_OK")
</pallas_src>

<mosaic_0001>
module attributes {stable_mosaic.version = 11 : i64} {
  func.func @mlp_kernel(%arg0: i32, %arg1: memref<1x16x80xf32, #tpu.memory_space<vmem>>, %arg2: memref<80x32xf32, #tpu.memory_space<vmem>>, %arg3: memref<1x32xf32, #tpu.memory_space<vmem>>, %arg4: memref<1x32xf32, #tpu.memory_space<vmem>>, %arg5: memref<32x32xf32, #tpu.memory_space<vmem>>, %arg6: memref<1x32xf32, #tpu.memory_space<vmem>>, %arg7: memref<1x32xf32, #tpu.memory_space<vmem>>, %arg8: memref<32x32xf32, #tpu.memory_space<vmem>>, %arg9: memref<1x32xf32, #tpu.memory_space<vmem>>, %arg10: memref<1x32xf32, #tpu.memory_space<vmem>>, %arg11: memref<32x32xf32, #tpu.memory_space<vmem>>, %arg12: memref<1x32xf32, #tpu.memory_space<vmem>>, %arg13: memref<1x32xf32, #tpu.memory_space<vmem>>, %arg14: memref<32x128xf32, #tpu.memory_space<vmem>>, %arg15: memref<1x1x128xf32, #tpu.memory_space<vmem>>) attributes {dimension_semantics = [#tpu.dimension_semantics<parallel>], iteration_bounds = array<i64: 2>, scalar_prefetch = 0 : i64, scratch_operands = 0 : i64, tpu.core_type = #tpu.core_type<tc>, window_params = [{transform_indices = @transform_0, window_bounds = array<i64: 1, 16, 80>}, {pipeline_mode = #tpu.pipeline_mode<synchronous>, transform_indices = @transform_1, window_bounds = array<i64: 80, 32>}, {pipeline_mode = #tpu.pipeline_mode<synchronous>, transform_indices = @transform_2, window_bounds = array<i64: 1, 32>}, {pipeline_mode = #tpu.pipeline_mode<synchronous>, transform_indices = @transform_3, window_bounds = array<i64: 1, 32>}, {pipeline_mode = #tpu.pipeline_mode<synchronous>, transform_indices = @transform_4, window_bounds = array<i64: 32, 32>}, {pipeline_mode = #tpu.pipeline_mode<synchronous>, transform_indices = @transform_5, window_bounds = array<i64: 1, 32>}, {pipeline_mode = #tpu.pipeline_mode<synchronous>, transform_indices = @transform_6, window_bounds = array<i64: 1, 32>}, {pipeline_mode = #tpu.pipeline_mode<synchronous>, transform_indices = @transform_7, window_bounds = array<i64: 32, 32>}, {pipeline_mode = #tpu.pipeline_mode<synchronous>, transform_indices = @transform_8, window_bounds = array<i64: 1, 32>}, {pipeline_mode = #tpu.pipeline_mode<synchronous>, transform_indices = @transform_9, window_bounds = array<i64: 1, 32>}, {pipeline_mode = #tpu.pipeline_mode<synchronous>, transform_indices = @transform_10, window_bounds = array<i64: 32, 32>}, {pipeline_mode = #tpu.pipeline_mode<synchronous>, transform_indices = @transform_11, window_bounds = array<i64: 1, 32>}, {pipeline_mode = #tpu.pipeline_mode<synchronous>, transform_indices = @transform_12, window_bounds = array<i64: 1, 32>}, {pipeline_mode = #tpu.pipeline_mode<synchronous>, transform_indices = @transform_13, window_bounds = array<i64: 32, 128>}, {transform_indices = @transform_14, window_bounds = array<i64: 1, 1, 128>}]} {
    %c0 = arith.constant 0 : index
    %c0_0 = arith.constant 0 : index
    %c0_1 = arith.constant 0 : index
    %0 = vector.load %arg1[%c0, %c0_0, %c0_1] : memref<1x16x80xf32, #tpu.memory_space<vmem>>, vector<1x16x80xf32>
    %1 = vector.shape_cast %0 : vector<1x16x80xf32> to vector<16x80xf32>
    %c0_2 = arith.constant 0 : index
    %c0_3 = arith.constant 0 : index
    %2 = vector.load %arg2[%c0_2, %c0_3] : memref<80x32xf32, #tpu.memory_space<vmem>>, vector<80x32xf32>
    %cst = arith.constant dense<0.000000e+00> : vector<16x32xf32>
    %3 = tpu.matmul %1, %2, %cst {dimension_numbers = #tpu.dot_dimension_numbers<[1], [0], [0], [1], [0, 0, 1, 1], [], []>} : vector<16x80xf32>, vector<80x32xf32>, vector<16x32xf32> -> vector<16x32xf32>
    %c0_4 = arith.constant 0 : index
    %c0_5 = arith.constant 0 : index
    %4 = vector.load %arg3[%c0_4, %c0_5] : memref<1x32xf32, #tpu.memory_space<vmem>>, vector<1x32xf32>
    %c0_6 = arith.constant 0 : index
    %c0_7 = arith.constant 0 : index
    %5 = vector.load %arg4[%c0_6, %c0_7] : memref<1x32xf32, #tpu.memory_space<vmem>>, vector<1x32xf32>
    %cst_8 = arith.constant dense<0.000000e+00> : vector<16xf32>
    %6 = vector.multi_reduction <add>, %3, %cst_8 [1] : vector<16x32xf32> to vector<16xf32>
    %7 = vector.shape_cast %6 : vector<16xf32> to vector<16x1xf32>
    %cst_9 = arith.constant 3.125000e-02 : f32
    %8 = vector.broadcast %cst_9 : f32 to vector<16x1xf32>
    %9 = arith.mulf %7, %8 : vector<16x1xf32>
    %10 = vector.broadcast %9 : vector<16x1xf32> to vector<16x32xf32>
    %11 = arith.subf %3, %10 : vector<16x32xf32>
    %12 = arith.mulf %11, %11 : vector<16x32xf32>
    %cst_10 = arith.constant dense<0.000000e+00> : vector<16xf32>
    %13 = vector.multi_reduction <add>, %12, %cst_10 [1] : vector<16x32xf32> to vector<16xf32>
    %14 = vector.shape_cast %13 : vector<16xf32> to vector<16x1xf32>
    %cst_11 = arith.constant 3.125000e-02 : f32
    %15 = vector.broadcast %cst_11 : f32 to vector<16x1xf32>
    %16 = arith.mulf %14, %15 : vector<16x1xf32>
    %cst_12 = arith.constant 9.99999974E-6 : f32
    %17 = vector.broadcast %cst_12 : f32 to vector<16x1xf32>
    %18 = arith.addf %16, %17 : vector<16x1xf32>
    %19 = math.rsqrt %18 : vector<16x1xf32>
    %20 = vector.broadcast %19 : vector<16x1xf32> to vector<16x32xf32>
    %21 = arith.mulf %11, %20 : vector<16x32xf32>
    %22 = vector.broadcast %4 : vector<1x32xf32> to vector<16x32xf32>
    %23 = arith.mulf %21, %22 : vector<16x32xf32>
    %24 = vector.broadcast %5 : vector<1x32xf32> to vector<16x32xf32>
    %25 = arith.addf %23, %24 : vector<16x32xf32>
    %cst_13 = arith.constant 0.000000e+00 : f32
    %26 = vector.broadcast %cst_13 : f32 to vector<16x32xf32>
    %27 = arith.maximumf %25, %26 : vector<16x32xf32>
    %c0_14 = arith.constant 0 : index
    %c0_15 = arith.constant 0 : index
    %28 = vector.load %arg5[%c0_14, %c0_15] : memref<32x32xf32, #tpu.memory_space<vmem>>, vector<32x32xf32>
    %cst_16 = arith.constant dense<0.000000e+00> : vector<16x32xf32>
    %29 = tpu.matmul %27, %28, %cst_16 {dimension_numbers = #tpu.dot_dimension_numbers<[1], [0], [0], [1], [0, 0, 1, 1], [], []>} : vector<16x32xf32>, vector<32x32xf32>, vector<16x32xf32> -> vector<16x32xf32>
    %c0_17 = arith.constant 0 : index
    %c0_18 = arith.constant 0 : index
    %30 = vector.load %arg6[%c0_17, %c0_18] : memref<1x32xf32, #tpu.memory_space<vmem>>, vector<1x32xf32>
    %c0_19 = arith.constant 0 : index
    %c0_20 = arith.constant 0 : index
    %31 = vector.load %arg7[%c0_19, %c0_20] : memref<1x32xf32, #tpu.memory_space<vmem>>, vector<1x32xf32>
    %cst_21 = arith.constant dense<0.000000e+00> : vector<16xf32>
    %32 = vector.multi_reduction <add>, %29, %cst_21 [1] : vector<16x32xf32> to vector<16xf32>
    %33 = vector.shape_cast %32 : vector<16xf32> to vector<16x1xf32>
    %cst_22 = arith.constant 3.125000e-02 : f32
    %34 = vector.broadcast %cst_22 : f32 to vector<16x1xf32>
    %35 = arith.mulf %33, %34 : vector<16x1xf32>
    %36 = vector.broadcast %35 : vector<16x1xf32> to vector<16x32xf32>
    %37 = arith.subf %29, %36 : vector<16x32xf32>
    %38 = arith.mulf %37, %37 : vector<16x32xf32>
    %cst_23 = arith.constant dense<0.000000e+00> : vector<16xf32>
    %39 = vector.multi_reduction <add>, %38, %cst_23 [1] : vector<16x32xf32> to vector<16xf32>
    %40 = vector.shape_cast %39 : vector<16xf32> to vector<16x1xf32>
    %cst_24 = arith.constant 3.125000e-02 : f32
    %41 = vector.broadcast %cst_24 : f32 to vector<16x1xf32>
    %42 = arith.mulf %40, %41 : vector<16x1xf32>
    %cst_25 = arith.constant 9.99999974E-6 : f32
    %43 = vector.broadcast %cst_25 : f32 to vector<16x1xf32>
    %44 = arith.addf %42, %43 : vector<16x1xf32>
    %45 = math.rsqrt %44 : vector<16x1xf32>
    %46 = vector.broadcast %45 : vector<16x1xf32> to vector<16x32xf32>
    %47 = arith.mulf %37, %46 : vector<16x32xf32>
    %48 = vector.broadcast %30 : vector<1x32xf32> to vector<16x32xf32>
    %49 = arith.mulf %47, %48 : vector<16x32xf32>
    %50 = vector.broadcast %31 : vector<1x32xf32> to vector<16x32xf32>
    %51 = arith.addf %49, %50 : vector<16x32xf32>
    %cst_26 = arith.constant 0.000000e+00 : f32
    %52 = vector.broadcast %cst_26 : f32 to vector<16x32xf32>
    %53 = arith.maximumf %51, %52 : vector<16x32xf32>
    %c0_27 = arith.constant 0 : index
    %c0_28 = arith.constant 0 : index
    %54 = vector.load %arg8[%c0_27, %c0_28] : memref<32x32xf32, #tpu.memory_space<vmem>>, vector<32x32xf32>
    %cst_29 = arith.constant dense<0.000000e+00> : vector<16x32xf32>
    %55 = tpu.matmul %53, %54, %cst_29 {dimension_numbers = #tpu.dot_dimension_numbers<[1], [0], [0], [1], [0, 0, 1, 1], [], []>} : vector<16x32xf32>, vector<32x32xf32>, vector<16x32xf32> -> vector<16x32xf32>
    %c0_30 = arith.constant 0 : index
    %c0_31 = arith.constant 0 : index
    %56 = vector.load %arg9[%c0_30, %c0_31] : memref<1x32xf32, #tpu.memory_space<vmem>>, vector<1x32xf32>
    %c0_32 = arith.constant 0 : index
    %c0_33 = arith.constant 0 : index
    %57 = vector.load %arg10[%c0_32, %c0_33] : memref<1x32xf32, #tpu.memory_space<vmem>>, vector<1x32xf32>
    %cst_34 = arith.constant dense<0.000000e+00> : vector<16xf32>
    %58 = vector.multi_reduction <add>, %55, %cst_34 [1] : vector<16x32xf32> to vector<16xf32>
    %59 = vector.shape_cast %58 : vector<16xf32> to vector<16x1xf32>
    %cst_35 = arith.constant 3.125000e-02 : f32
    %60 = vector.broadcast %cst_35 : f32 to vector<16x1xf32>
    %61 = arith.mulf %59, %60 : vector<16x1xf32>
    %62 = vector.broadcast %61 : vector<16x1xf32> to vector<16x32xf32>
    %63 = arith.subf %55, %62 : vector<16x32xf32>
    %64 = arith.mulf %63, %63 : vector<16x32xf32>
    %cst_36 = arith.constant dense<0.000000e+00> : vector<16xf32>
    %65 = vector.multi_reduction <add>, %64, %cst_36 [1] : vector<16x32xf32> to vector<16xf32>
    %66 = vector.shape_cast %65 : vector<16xf32> to vector<16x1xf32>
    %cst_37 = arith.constant 3.125000e-02 : f32
    %67 = vector.broadcast %cst_37 : f32 to vector<16x1xf32>
    %68 = arith.mulf %66, %67 : vector<16x1xf32>
    %cst_38 = arith.constant 9.99999974E-6 : f32
    %69 = vector.broadcast %cst_38 : f32 to vector<16x1xf32>
    %70 = arith.addf %68, %69 : vector<16x1xf32>
    %71 = math.rsqrt %70 : vector<16x1xf32>
    %72 = vector.broadcast %71 : vector<16x1xf32> to vector<16x32xf32>
    %73 = arith.mulf %63, %72 : vector<16x32xf32>
    %74 = vector.broadcast %56 : vector<1x32xf32> to vector<16x32xf32>
    %75 = arith.mulf %73, %74 : vector<16x32xf32>
    %76 = vector.broadcast %57 : vector<1x32xf32> to vector<16x32xf32>
    %77 = arith.addf %75, %76 : vector<16x32xf32>
    %cst_39 = arith.constant 0.000000e+00 : f32
    %78 = vector.broadcast %cst_39 : f32 to vector<16x32xf32>
    %79 = arith.maximumf %77, %78 : vector<16x32xf32>
    %c0_40 = arith.constant 0 : index
    %c0_41 = arith.constant 0 : index
    %80 = vector.load %arg11[%c0_40, %c0_41] : memref<32x32xf32, #tpu.memory_space<vmem>>, vector<32x32xf32>
    %cst_42 = arith.constant dense<0.000000e+00> : vector<16x32xf32>
    %81 = tpu.matmul %79, %80, %cst_42 {dimension_numbers = #tpu.dot_dimension_numbers<[1], [0], [0], [1], [0, 0, 1, 1], [], []>} : vector<16x32xf32>, vector<32x32xf32>, vector<16x32xf32> -> vector<16x32xf32>
    %c0_43 = arith.constant 0 : index
    %c0_44 = arith.constant 0 : index
    %82 = vector.load %arg12[%c0_43, %c0_44] : memref<1x32xf32, #tpu.memory_space<vmem>>, vector<1x32xf32>
    %c0_45 = arith.constant 0 : index
    %c0_46 = arith.constant 0 : index
    %83 = vector.load %arg13[%c0_45, %c0_46] : memref<1x32xf32, #tpu.memory_space<vmem>>, vector<1x32xf32>
    %cst_47 = arith.constant dense<0.000000e+00> : vector<16xf32>
    %84 = vector.multi_reduction <add>, %81, %cst_47 [1] : vector<16x32xf32> to vector<16xf32>
    %85 = vector.shape_cast %84 : vector<16xf32> to vector<16x1xf32>
    %cst_48 = arith.constant 3.125000e-02 : f32
    %86 = vector.broadcast %cst_48 : f32 to vector<16x1xf32>
    %87 = arith.mulf %85, %86 : vector<16x1xf32>
    %88 = vector.broadcast %87 : vector<16x1xf32> to vector<16x32xf32>
    %89 = arith.subf %81, %88 : vector<16x32xf32>
    %90 = arith.mulf %89, %89 : vector<16x32xf32>
    %cst_49 = arith.constant dense<0.000000e+00> : vector<16xf32>
    %91 = vector.multi_reduction <add>, %90, %cst_49 [1] : vector<16x32xf32> to vector<16xf32>
    %92 = vector.shape_cast %91 : vector<16xf32> to vector<16x1xf32>
    %cst_50 = arith.constant 3.125000e-02 : f32
    %93 = vector.broadcast %cst_50 : f32 to vector<16x1xf32>
    %94 = arith.mulf %92, %93 : vector<16x1xf32>
    %cst_51 = arith.constant 9.99999974E-6 : f32
    %95 = vector.broadcast %cst_51 : f32 to vector<16x1xf32>
    %96 = arith.addf %94, %95 : vector<16x1xf32>
    %97 = math.rsqrt %96 : vector<16x1xf32>
    %98 = vector.broadcast %97 : vector<16x1xf32> to vector<16x32xf32>
    %99 = arith.mulf %89, %98 : vector<16x32xf32>
    %100 = vector.broadcast %82 : vector<1x32xf32> to vector<16x32xf32>
    %101 = arith.mulf %99, %100 : vector<16x32xf32>
    %102 = vector.broadcast %83 : vector<1x32xf32> to vector<16x32xf32>
    %103 = arith.addf %101, %102 : vector<16x32xf32>
    %cst_52 = arith.constant 0.000000e+00 : f32
    %104 = vector.broadcast %cst_52 : f32 to vector<16x32xf32>
    %105 = arith.maximumf %103, %104 : vector<16x32xf32>
    %cst_53 = arith.constant dense<0.000000e+00> : vector<32xf32>
    %106 = vector.multi_reduction <add>, %105, %cst_53 [0] : vector<16x32xf32> to vector<32xf32>
    %107 = vector.shape_cast %106 : vector<32xf32> to vector<1x32xf32>
    %c0_54 = arith.constant 0 : index
    %c0_55 = arith.constant 0 : index
    %108 = vector.load %arg14[%c0_54, %c0_55] : memref<32x128xf32, #tpu.memory_space<vmem>>, vector<32x128xf32>
    %cst_56 = arith.constant dense<0.000000e+00> : vector<1x128xf32>
    %109 = tpu.matmul %107, %108, %cst_56 {dimension_numbers = #tpu.dot_dimension_numbers<[1], [0], [0], [1], [0, 0, 1, 1], [], []>} : vector<1x32xf32>, vector<32x128xf32>, vector<1x128xf32> -> vector<1x128xf32>
    %c0_57 = arith.constant 0 : index
    %c0_58 = arith.constant 0 : index
    %c0_59 = arith.constant 0 : index
    %110 = vector.load %arg15[%c0_57, %c0_58, %c0_59] : memref<1x1x128xf32, #tpu.memory_space<vmem>>, vector<1x1x128xf32>
    %111 = vector.shape_cast %110 : vector<1x1x128xf32> to vector<1x128xf32>
    %112 = vector.shape_cast %109 : vector<1x128xf32> to vector<1x1x128xf32>
    tpu.vector_store %arg15[%c0_57, %c0_58, %c0_59], %112 {strides = array<i32>} : memref<1x1x128xf32, #tpu.memory_space<vmem>>, vector<1x1x128xf32>,
    return
  }
  func.func @transform_0(%arg0: i32) -> (i32, i32, i32) {
    %c0_i32 = arith.constant 0 : i32
    %c0_i32_0 = arith.constant 0 : i32
    %c0_i32_1 = arith.constant 0 : i32
    return %arg0, %c0_i32, %c0_i32_0 : i32, i32, i32
  }
  func.func @transform_1(%arg0: i32) -> (i32, i32) {
    %c0_i32 = arith.constant 0 : i32
    %c0_i32_0 = arith.constant 0 : i32
    %c0_i32_1 = arith.constant 0 : i32
    return %c0_i32, %c0_i32_0 : i32, i32
  }
  func.func @transform_2(%arg0: i32) -> (i32, i32) {
    %c0_i32 = arith.constant 0 : i32
    %c0_i32_0 = arith.constant 0 : i32
    %c0_i32_1 = arith.constant 0 : i32
    return %c0_i32, %c0_i32_0 : i32, i32
  }
  func.func @transform_3(%arg0: i32) -> (i32, i32) {
    %c0_i32 = arith.constant 0 : i32
    %c0_i32_0 = arith.constant 0 : i32
    %c0_i32_1 = arith.constant 0 : i32
    return %c0_i32, %c0_i32_0 : i32, i32
  }
  func.func @transform_4(%arg0: i32) -> (i32, i32) {
    %c0_i32 = arith.constant 0 : i32
    %c0_i32_0 = arith.constant 0 : i32
    %c0_i32_1 = arith.constant 0 : i32
    return %c0_i32, %c0_i32_0 : i32, i32
  }
  func.func @transform_5(%arg0: i32) -> (i32, i32) {
    %c0_i32 = arith.constant 0 : i32
    %c0_i32_0 = arith.constant 0 : i32
    %c0_i32_1 = arith.constant 0 : i32
    return %c0_i32, %c0_i32_0 : i32, i32
  }
  func.func @transform_6(%arg0: i32) -> (i32, i32) {
    %c0_i32 = arith.constant 0 : i32
    %c0_i32_0 = arith.constant 0 : i32
    %c0_i32_1 = arith.constant 0 : i32
    return %c0_i32, %c0_i32_0 : i32, i32
  }
  func.func @transform_7(%arg0: i32) -> (i32, i32) {
    %c0_i32 = arith.constant 0 : i32
    %c0_i32_0 = arith.constant 0 : i32
    %c0_i32_1 = arith.constant 0 : i32
    return %c0_i32, %c0_i32_0 : i32, i32
  }
  func.func @transform_8(%arg0: i32) -> (i32, i32) {
    %c0_i32 = arith.constant 0 : i32
    %c0_i32_0 = arith.constant 0 : i32
    %c0_i32_1 = arith.constant 0 : i32
    return %c0_i32, %c0_i32_0 : i32, i32
  }
  func.func @transform_9(%arg0: i32) -> (i32, i32) {
    %c0_i32 = arith.constant 0 : i32
    %c0_i32_0 = arith.constant 0 : i32
    %c0_i32_1 = arith.constant 0 : i32
    return %c0_i32, %c0_i32_0 : i32, i32
  }
  func.func @transform_10(%arg0: i32) -> (i32, i32) {
    %c0_i32 = arith.constant 0 : i32
    %c0_i32_0 = arith.constant 0 : i32
    %c0_i32_1 = arith.constant 0 : i32
    return %c0_i32, %c0_i32_0 : i32, i32
  }
  func.func @transform_11(%arg0: i32) -> (i32, i32) {
    %c0_i32 = arith.constant 0 : i32
    %c0_i32_0 = arith.constant 0 : i32
    %c0_i32_1 = arith.constant 0 : i32
    return %c0_i32, %c0_i32_0 : i32, i32
  }
  func.func @transform_12(%arg0: i32) -> (i32, i32) {
    %c0_i32 = arith.constant 0 : i32
    %c0_i32_0 = arith.constant 0 : i32
    %c0_i32_1 = arith.constant 0 : i32
    return %c0_i32, %c0_i32_0 : i32, i32
  }
  func.func @transform_13(%arg0: i32) -> (i32, i32) {
    %c0_i32 = arith.constant 0 : i32
    %c0_i32_0 = arith.constant 0 : i32
    %c0_i32_1 = arith.constant 0 : i32
    return %c0_i32, %c0_i32_0 : i32, i32
  }
  func.func @transform_14(%arg0: i32) -> (i32, i32, i32) {
    %c0_i32 = arith.constant 0 : i32
    %c0_i32_0 = arith.constant 0 : i32
    %c0_i32_1 = arith.constant 0 : i32
    return %arg0, %c0_i32, %c0_i32_0 : i32, i32, i32
  }
}

</mosaic_0001>

<bundles_post_ra>
// kernel: tpu_custom_call.1
= control target key start
LH: loop header
LB: loop body
LE: loop exit
PB: predicated region body
PF: predicated region fallthrough
CT: control target
= control target key end

     0   :  { %s2382_s0 = inlined_call_operand.vmem [shape: f32[2,16,80], index: 0, kind: input, shape index: {}]   ;;  %s2383_s1 = inlined_call_operand.vmem [shape: f32[80,32], index: 1, kind: input, shape index: {}]   ;;  %s2384_s2 = inlined_call_operand.vmem [shape: f32[1,32], index: 2, kind: input, shape index: {}]   ;;  %s2385_s3 = inlined_call_operand.hbm [shape: f32[1,32], index: 3, kind: input, shape index: {}]   ;;  %s2386_s4 = inlined_call_operand.vmem [shape: f32[32,32], index: 4, kind: input, shape index: {}]   ;;  %s2387_s5 = inlined_call_operand.hbm [shape: f32[1,32], index: 5, kind: input, shape index: {}]   ;;  %s2388_s6 = inlined_call_operand.hbm [shape: f32[1,32], index: 6, kind: input, shape index: {}]   ;;  %s2389_s7 = inlined_call_operand.vmem [shape: f32[32,32], index: 7, kind: input, shape index: {}]   ;;  %s2390_s8 = inlined_call_operand.hbm [shape: f32[1,32], index: 8, kind: input, shape index: {}]   ;;  %s2391_s9 = inlined_call_operand.hbm [shape: f32[1,32], index: 9, kind: input, shape index: {}]   ;;  %s2392_s10 = inlined_call_operand.vmem [shape: f32[32,32], index: 10, kind: input, shape index: {}]   ;;  %s2393_s11 = inlined_call_operand.hbm [shape: f32[1,32], index: 11, kind: input, shape index: {}]   ;;  %s2394_s12 = inlined_call_operand.hbm [shape: f32[1,32], index: 12, kind: input, shape index: {}]   ;;  %s2395_s13 = inlined_call_operand.vmem [shape: f32[32,128], index: 13, kind: input, shape index: {}]   ;;  %s2396_s14 = inlined_call_operand.hbm [shape: f32[2,1,128], index: 14, kind: output, shape index: {}]  }
   0x1   :  { %2409 = sst [smem:[#allocation27_spill]] %s2387_s5 }
   0x2   :  { %2410 = sst [smem:[#allocation28_spill]] %s2396_s14 }
   0x3   :  { %19 = vsyncpa [#allocation3], 0 }
   0x4   :  { %20 = vsyncpa [#allocation6], 0 }
   0x5   :  { %21 = vsyncpa [#allocation9], 0 }
   0x6   :  { %22 = vsyncpa [#allocation12], 0 }
   0x7   :  { %23 = vsyncpa [#allocation4], 0 }
   0x8   :  { %25 = vsyncpa [#allocation4 + $0x1], 0  ;;  %s1995_s29 = smov 0   ;;  %s1997_s30 = smov 0  }
   0x9   :  { %s1999_s15 = smov 0   ;;  %s2001_s16 = smov 0  }
   0xa LB: > { %2411 = sst [smem:[#allocation20_spill]] %s1895_s29  ;;  %s2016_s17 = sadd.s32 4294967295, %s1907_s16   ;;  %s1907_s16 = sphi %s2001_s16, %s2440_s16   ;;  %s1903_s15 = sphi %s1999_s15, %s2442_s15   ;;  %s1899_s30 = sphi %s1997_s30, %s2444_s30   ;;  %s1895_s29 = sphi %s1995_s29, %s2443_s29  }
   0xb   : > { %2412 = sst [smem:[#allocation21_spill]] %s1903_s15  ;;  %s1311_s18 = sadd.s32 4294967294, %s1907_s16  }
   0xc   : > { %2413 = sst [smem:[#allocation22_spill]] %s1907_s16  ;;  %s2020_s19 = sadd.s32 1, %s1907_s16  }
   0xd   : > { %2414 = sst [smem:[#allocation23_spill]] %s2020_s19  ;;  %s337_s20 = sadd.s32 1, %s1903_s15 }
   0xe   : > { %s334_s21 = ssub.s32 %s1907_s16, %s2020_s19  ;;  %p347_p0 = scmp.ne.s32.totalorder %s1903_s15, %s1899_s30 }
   0xf   : > { %p335_p1 = scmp.eq.s32.totalorder %s334_s21, 0  ;;  %p348_p2 = scmp.eq.s32.totalorder %s2016_s17, 1 }
  0x10   : > { %p353_p3 = scmp.ne.s32.totalorder %s1899_s30, %s1895_s29  ;;  %p354_p4 = scmp.eq.s32.totalorder %s1311_s18, 1 }
  0x11   : > { %s2031_s22 = scalar_select %p335_p1, %s1903_s15, %s337_s20  }
  0x12   : > { %p2033_p5 = por %p348_p2, %p347_p0  ;;  %p2037_p6 = por %p354_p4, %p353_p3 }
  0x13   : > { %2415 = sst [smem:[#allocation24_spill]] %s2031_s22  ;;  %p1312_p7 = scmp.ge.s32.totalorder %s1907_s16, 1 }
  0x14   : > { %s2416_s23 = scalar_select %p2033_p5, 1, 0 }
  0x15   : > { %s2418_s24 = scalar_select %p2037_p6, 1, 0 }
  0x16   : > { %2417 = sst [smem:[#allocation25_spill]] %s2416_s23  ;;  %p361_p8 = scmp.lt.s32.totalorder %s1907_s16, 3 }
  0x17   : > { %2419 = sst [smem:[#allocation26_spill]] %s2418_s24  ;;  %p2403_p9 = scmp.eq.s32.totalorder %s2016_s17, 0 }
  0x18   : > { %p2044_p10 = pnand %p1312_p7, %p361_p8  ;;  %s1909_s26 = smov [#allocation5]  }
  0x19   : > { %s394_s27 = sshll.u32 %s1909_s26, 4  ;;  %s1910_s28 = smov [#allocation8]   ;;  %s395_s27 = int_to_ptr.vmem [resolvable:$true] %s394_s27 }
  0x1a   : > { %s2420_s25 = scalar_select %p2044_p10, 1, 0 }
  0x1b   : > { %p1534_p11 = pneg %p2044_p10  ;;  %s419_s18 = sshll.u32 %s1910_s28, 4  ;;  %s2056_s18 = int_to_ptr.vmem [resolvable:$true] %s419_s18 }
  0x1c   : > { %s1911_s21 = smov [#allocation11]   ;;  %s2422_s5 = sld [smem:[#allocation27_spill]] }
  0x1d   : > { %p2052_p12 = pnand %p2403_p9, %p1534_p11  ;;  %s444_s22 = sshll.u32 %s1911_s21, 4  ;;  %s2058_s22 = int_to_ptr.vmem [resolvable:$true] %s444_s22 }
  0x1f   : > { %p2068_p0 = pneg %p2052_p12 }
  0x22   : > { %s1633_s26 = scalar_lea.hbm %s2422_s5, 16 }
  0x23   : > { %p1634_p13 = scmp.ne.s32.totalorder %s2422_s5, %s1633_s26  ;;  %p1640_p3 = scmp.lt.u32.totalorder %s1633_s26, %s2422_s5 }
  0x25   : > { %p1636_p1 = pnand %p2068_p0, %p1634_p13 }
  0x27   : > { %p1637_p2 = pneg %p1636_p1 }
  0x29   : > { %p1642_p4 = pnand %p1640_p3, %p1637_p2 }
  0x2b   : > { %1645 = shalt.err (!%p1642_p4)
}
  0x2c   : > { %s1646_s15 = scalar_lea.vmem %s395_s27, 16  ;;  %s1653_s29 = scalar_lea.vmem %s395_s27, 32 }
  0x2d   : > { %p1647_p7 = scmp.ne.s32.totalorder %s395_s27, %s1646_s15  ;;  %p1654_p9 = scmp.lt.s32.totalorder %s395_s27, %s395_s27 }
  0x2e   : > { %p1655_p6 = scmp.lt.s32.totalorder %s1653_s29, %s1646_s15 }
  0x2f   : > { %p1649_p8 = pnand %p1647_p7, %p2068_p0 }
  0x30   : > { %p1656_p5 = por %p1655_p6, %p1654_p9 }
  0x31   : > { %p1650_p11 = pneg %p1649_p8 }
  0x33   : > { %p1657_p10 = pnand %p1656_p5, %p1650_p11 }
  0x35   : > { %1660 = shalt.err (!%p1657_p10)
}
  0x36   : > { %1540 = dma.hbm_to_vmem [thread:$0]  (!%p2052_p12), %s2422_s5, 16, %s395_s27, [#allocation6]  }
  0x37   : > { %s1661_s21 = scalar_lea.hbm %s2390_s8, 16 }
  0x38   : > { %p1662_p13 = scmp.ne.s32.totalorder %s2390_s8, %s1661_s21  ;;  %p1668_p5 = scmp.lt.u32.totalorder %s1661_s21, %s2390_s8 }
  0x3a   : > { %p1664_p1 = pnand %p1662_p13, %p2068_p0 }
  0x3c   : > { %p1665_p6 = pneg %p1664_p1 }
  0x3e   : > { %p1670_p9 = pnand %p1668_p5, %p1665_p6 }
  0x40   : > { %1673 = shalt.err (!%p1670_p9)
}
  0x41   : > { %s1674_s27 = scalar_lea.vmem %s2056_s18, 16  ;;  %s1681_s14 = scalar_lea.vmem %s2056_s18, 32 }
  0x42   : > { %p1675_p10 = scmp.ne.s32.totalorder %s2056_s18, %s1674_s27  ;;  %p1682_p4 = scmp.lt.s32.totalorder %s2056_s18, %s2056_s18 }
  0x43   : > { %p1683_p7 = scmp.lt.s32.totalorder %s1681_s14, %s1674_s27 }
  0x44   : > { %p1677_p2 = pnand %p1675_p10, %p2068_p0 }
  0x45   : > { %p1684_p8 = por %p1683_p7, %p1682_p4 }
  0x46   : > { %p1678_p3 = pneg %p1677_p2 }
  0x48   : > { %p1685_p11 = pnand %p1684_p8, %p1678_p3 }
  0x4a   : > { %1688 = shalt.err (!%p1685_p11)
}
  0x4b   : > { %1546 = dma.hbm_to_vmem [thread:$0]  (!%p2052_p12), %s2390_s8, 16, %s2056_s18, [#allocation9]  }
  0x4c   : > { %s1689_s26 = scalar_lea.hbm %s2393_s11, 16 }
  0x4d   : > { %p1690_p13 = scmp.ne.s32.totalorder %s2393_s11, %s1689_s26  ;;  %p1696_p5 = scmp.lt.u32.totalorder %s1689_s26, %s2393_s11 }
  0x4f   : > { %p1692_p1 = pnand %p1690_p13, %p2068_p0 }
  0x51   : > { %p1693_p6 = pneg %p1692_p1 }
  0x53   : > { %p1698_p9 = pnand %p1696_p5, %p1693_p6 }
  0x55   : > { %1701 = shalt.err (!%p1698_p9)
}
  0x56   : > { %s1702_s18 = scalar_lea.vmem %s2058_s22, 16  ;;  %s1709_s14 = scalar_lea.vmem %s2058_s22, 32 }
  0x57   : > { %p1703_p10 = scmp.ne.s32.totalorder %s2058_s22, %s1702_s18  ;;  %p1710_p4 = scmp.lt.s32.totalorder %s2058_s22, %s2058_s22 }
  0x58   : > { %p1711_p7 = scmp.lt.s32.totalorder %s1709_s14, %s1702_s18 }
  0x59   : > { %p1705_p2 = pnand %p1703_p10, %p2068_p0 }
  0x5a   : > { %p1712_p8 = por %p1711_p7, %p1710_p4 }
  0x5b   : > { %p1706_p3 = pneg %p1705_p2 }
  0x5d   : > { %p1713_p11 = pnand %p1712_p8, %p1706_p3 }
  0x5f   : > { %1716 = shalt.err (!%p1713_p11)
}
  0x60   : > { %1552 = dma.hbm_to_vmem [thread:$0]  (!%p2052_p12), %s2393_s11, 16, %s2058_s22, [#allocation12]  }
  0x61   : > { %s1912_s24 = smov [#allocation2]   ;;  %s1913_s26 = smov [#allocation7]  }
  0x62   : > { %s380_s16 = sshll.u32 %s1912_s24, 4  ;;  %s405_s21 = sshll.u32 %s1913_s26, 4  ;;  %s381_s16 = int_to_ptr.vmem [resolvable:$true] %s380_s16  ;;  %s406_s21 = int_to_ptr.vmem [resolvable:$true] %s405_s21 }
  0x63   : > { %s1717_s27 = scalar_lea.hbm %s2385_s3, 16 }
  0x64   : > { %p1718_p13 = scmp.ne.s32.totalorder %s2385_s3, %s1717_s27  ;;  %p1724_p5 = scmp.lt.u32.totalorder %s1717_s27, %s2385_s3 }
  0x66   : > { %p1720_p1 = pnand %p1718_p13, %p2068_p0 }
  0x68   : > { %p1721_p6 = pneg %p1720_p1 }
  0x6a   : > { %p1726_p9 = pnand %p1724_p5, %p1721_p6 }
  0x6c   : > { %1729 = shalt.err (!%p1726_p9)
}
  0x6d   : > { %s1730_s22 = scalar_lea.vmem %s381_s16, 16  ;;  %s1737_s19 = scalar_lea.vmem %s381_s16, 32 }
  0x6e   : > { %p1731_p10 = scmp.ne.s32.totalorder %s381_s16, %s1730_s22  ;;  %p1738_p4 = scmp.lt.s32.totalorder %s381_s16, %s381_s16 }
  0x6f   : > { %p1739_p7 = scmp.lt.s32.totalorder %s1737_s19, %s1730_s22 }
  0x70   : > { %p1733_p2 = pnand %p1731_p10, %p2068_p0 }
  0x71   : > { %p1740_p8 = por %p1739_p7, %p1738_p4 }
  0x72   : > { %p1734_p3 = pneg %p1733_p2 }
  0x74   : > { %p1741_p11 = pnand %p1740_p8, %p1734_p3 }
  0x76   : > { %1744 = shalt.err (!%p1741_p11)
}
  0x77   : > { %1537 = dma.hbm_to_vmem [thread:$0]  (!%p2052_p12), %s2385_s3, 16, %s381_s16, [#allocation3]  }
  0x78   : > { %s1745_s29 = scalar_lea.hbm %s2388_s6, 16 }
  0x79   : > { %p1746_p13 = scmp.ne.s32.totalorder %s2388_s6, %s1745_s29  ;;  %p1752_p5 = scmp.lt.u32.totalorder %s1745_s29, %s2388_s6 }
  0x7b   : > { %p1748_p1 = pnand %p1746_p13, %p2068_p0 }
  0x7d   : > { %p1749_p6 = pneg %p1748_p1 }
  0x7f   : > { %p1754_p9 = pnand %p1752_p5, %p1749_p6 }
  0x81   : > { %1757 = shalt.err (!%p1754_p9)
}
  0x82   : > { %s1758_s22 = scalar_lea.vmem %s406_s21, 16  ;;  %s1765_s16 = scalar_lea.vmem %s406_s21, 32 }
  0x83   : > { %p1759_p10 = scmp.ne.s32.totalorder %s406_s21, %s1758_s22  ;;  %p1766_p4 = scmp.lt.s32.totalorder %s406_s21, %s406_s21 }
  0x84   : > { %p1767_p7 = scmp.lt.s32.totalorder %s1765_s16, %s1758_s22 }
  0x85   : > { %p1761_p2 = pnand %p1759_p10, %p2068_p0 }
  0x86   : > { %p1768_p8 = por %p1767_p7, %p1766_p4 }
  0x87   : > { %p1762_p3 = pneg %p1761_p2 }
  0x89   : > { %p1769_p11 = pnand %p1768_p8, %p1762_p3 }
  0x8b   : > { %1772 = shalt.err (!%p1769_p11)
}
  0x8c   : > { %1543 = dma.hbm_to_vmem [thread:$0]  (!%p2052_p12), %s2388_s6, 16, %s406_s21, [#allocation6]  }
  0x8d   : > { %s1914_s26 = smov [#allocation10]   ;;  %s1915_s15 = smov [#allocation13]  }
  0x8e   : > { %s430_s5 = sshll.u32 %s1914_s26, 4  ;;  %s455_s29 = sshll.u32 %s1915_s15, 4  ;;  %s431_s5 = int_to_ptr.vmem [resolvable:$true] %s430_s5  ;;  %s456_s29 = int_to_ptr.vmem [resolvable:$true] %s455_s29 }
  0x8f   : > { %s1773_s14 = scalar_lea.hbm %s2391_s9, 16 }
  0x90   : > { %p1774_p13 = scmp.ne.s32.totalorder %s2391_s9, %s1773_s14  ;;  %p1780_p5 = scmp.lt.u32.totalorder %s1773_s14, %s2391_s9 }
  0x92   : > { %p1776_p1 = pnand %p1774_p13, %p2068_p0 }
  0x94   : > { %p1777_p6 = pneg %p1776_p1 }
  0x96   : > { %p1782_p9 = pnand %p1780_p5, %p1777_p6 }
  0x98   : > { %1785 = shalt.err (!%p1782_p9)
}
  0x99   : > { %s1786_s21 = scalar_lea.vmem %s431_s5, 16  ;;  %s1793_s24 = scalar_lea.vmem %s431_s5, 32 }
  0x9a   : > { %p1787_p10 = scmp.ne.s32.totalorder %s431_s5, %s1786_s21  ;;  %p1794_p4 = scmp.lt.s32.totalorder %s431_s5, %s431_s5 }
  0x9b   : > { %p1795_p7 = scmp.lt.s32.totalorder %s1793_s24, %s1786_s21 }
  0x9c   : > { %p1789_p2 = pnand %p1787_p10, %p2068_p0 }
  0x9d   : > { %p1796_p8 = por %p1795_p7, %p1794_p4 }
  0x9e   : > { %p1790_p3 = pneg %p1789_p2 }
  0xa0   : > { %p1797_p11 = pnand %p1796_p8, %p1790_p3 }
  0xa2   : > { %1800 = shalt.err (!%p1797_p11)
}
  0xa3   : > { %1549 = dma.hbm_to_vmem [thread:$0]  (!%p2052_p12), %s2391_s9, 16, %s431_s5, [#allocation9]  }
  0xa4   : > { %s1801_s14 = scalar_lea.hbm %s2394_s12, 16 }
  0xa5   : > { %p1802_p13 = scmp.ne.s32.totalorder %s2394_s12, %s1801_s14  ;;  %p1808_p5 = scmp.lt.u32.totalorder %s1801_s14, %s2394_s12 }
  0xa7   : > { %p1804_p1 = pnand %p1802_p13, %p2068_p0 }
  0xa9   : > { %p1805_p6 = pneg %p1804_p1 }
  0xab   : > { %p1810_p9 = pnand %p1808_p5, %p1805_p6 }
  0xad   : > { %1813 = shalt.err (!%p1810_p9)
}
  0xae   : > { %s1814_s21 = scalar_lea.vmem %s456_s29, 16  ;;  %s1821_s5 = scalar_lea.vmem %s456_s29, 32 }
  0xaf   : > { %p1815_p10 = scmp.ne.s32.totalorder %s456_s29, %s1814_s21  ;;  %p1822_p4 = scmp.lt.s32.totalorder %s456_s29, %s456_s29 }
  0xb0   : > { %p1823_p7 = scmp.lt.s32.totalorder %s1821_s5, %s1814_s21 }
  0xb1   : > { %p1817_p2 = pnand %p1815_p10, %p2068_p0 }
  0xb2   : > { %p1824_p8 = por %p1823_p7, %p1822_p4 }
  0xb3   : > { %p1818_p3 = pneg %p1817_p2 }
  0xb5   : > { %p1825_p11 = pnand %p1824_p8, %p1818_p3 }
  0xb7   : > { %1828 = shalt.err (!%p1825_p11)
}
  0xb8   : > { %1555 = dma.hbm_to_vmem [thread:$0]  (!%p2052_p12), %s2394_s12, 16, %s456_s29, [#allocation12]  }
  0xb9   : > { %p2424_p13 = scmp.ne.s32.totalorder %s2420_s25, 0 }
  0xba   : > { %p2425_p1 = scmp.eq.s32.totalorder (!%p2424_p13), %s2016_s17, 0 }
  0xbb   : > { %479 = sbr.rel (%p2424_p13) target bundleno = 2587 (0xa1b), region = 76 }
  0xc2   : > { %1874 = dma.done.wait (%p2425_p1), [#allocation3], 16   ;;  %p2426_p0 = pmov %p2425_p1 }
  0xc4   : > { %1876 = vsyncadd (%p2426_p0), [#allocation3], 4294967280  ;;  %p2427_p6 = pmov %p2426_p0 }
  0xc5   : > { %p2428_p5 = pmov %p2426_p0 }
  0xc6   : > { %1878 = dma.done.wait (%p2427_p6), [#allocation6], 32  }
  0xc7   : > { %1880 = vsyncadd (%p2428_p5), [#allocation6], 4294967264  ;;  %p2429_p9 = pmov %p2426_p0 }
  0xc8   : > { %p2430_p12 = pmov %p2426_p0 }
  0xc9   : > { %1882 = dma.done.wait (%p2429_p9), [#allocation9], 32  }
  0xca   : > { %1884 = vsyncadd (%p2430_p12), [#allocation9], 4294967264  ;;  %p2431_p10 = pmov %p2426_p0 }
  0xcb   : > { %p2432_p2 = pmov %p2426_p0 }
  0xcc   : > { %1886 = dma.done.wait (%p2431_p10), [#allocation12], 32  }
  0xcd   : > { %1888 = vsyncadd (%p2432_p2), [#allocation12], 4294967264  ;;  %p548_p3 = scmp.lt.s32.totalorder %s2016_s17, 1  ;;  %v555_v0 = vld [vmem:[%s2383_s1] sm:$0xff]  ;;  %v556_v1 = vld [vmem:[%s2383_s1 + $0x8] sm:$0xff]  ;;  %vm565_vm0 = vcmask 654336  }
  0xce   : > { %v557_v2 = vld [vmem:[%s2383_s1 + $0x10] sm:$0xff]  ;;  %v1454_v3 = vpack.c.bf16 %v556_v1, %v555_v0  ;;  %v558_v4 = vld [vmem:[%s2383_s1 + $0x18] sm:$0xff]  ;;  %v559_v6 = vld [vmem:[%s2383_s1 + $0x20] sm:$0xff]  ;;  %vm649_vm1 = vcmask 261120   ;;  %vm1917_vm2 = vmmov 0   ;;  %s2433_s19 = sld [smem:[#allocation25_spill]] }
  0xcf   : > { %s549_s25 = scalar_select %p548_p3, %s2016_s17, 1  ;;  %v1458_v5 = vpack.c.bf16 %v558_v4, %v557_v2  ;;  %v560_v7 = vld [vmem:[%s2383_s1 + $0x28] sm:$0xff]  ;;  %v561_v10 = vld [vmem:[%s2383_s1 + $0x30] sm:$0xff]  ;;  %v562_v11 = vld [vmem:[%s2383_s1 + $0x38] sm:$0xff] }
  0xd0   : > { %1455 = vmatprep.subr.bf16.mxu0 %v1454_v3  ;;  %v1462_v9 = vpack.c.bf16 %v560_v7, %v559_v6  ;;  %v1466_v12 = vpack.c.bf16 %v562_v11, %v561_v10  ;;  %v563_v13 = vld [vmem:[%s2383_s1 + $0x40] sm:$0xff]  ;;  %v564_v14 = vld [vmem:[%s2383_s1 + $0x48] sm:$0xff]  ;;  %v696_v33 = vld [vmem:[%s2386_s4 + $0x10] sm:$0xff]  ;;  %s546_s21 = sand.u32 1, %s1899_s30   ;;  %s1348_s26 = sshll.u32 %s2016_s17, 4 }
  0xd1   : > { %s1351_s20 = sshll.u32 %s549_s25, 4  ;;  %1457 = vmatpush3.bf16.msra.mxu0 %v1454_v3  ;;  %v1470_v15 = vpack.c.bf16 %v564_v14, %v563_v13  ;;  %v694_v31 = vld [vmem:[%s2386_s4] sm:$0xff]  ;;  %v695_v32 = vld [vmem:[%s2386_s4 + $0x8] sm:$0xff]  ;;  %v697_v35 = vld [vmem:[%s2386_s4 + $0x18] sm:$0xff]  ;;  %s547_s5 = scalar_lea.vmem [#allocation14], %s546_s21 }
  0xd2   : > { %s552_s16 = scalar_lea.vmem %s2382_s0, %s1351_s20  ;;  %1459 = vmatprep.subr.bf16.mxu0 %v1458_v5  ;;  %v1474_v34 = vpack.c.bf16 %v695_v32, %v694_v31  ;;  %v1478_v36 = vpack.c.bf16 %v697_v35, %v696_v33  ;;  %v1333_v44 = vld [vmem:[%s2384_s2] ss:$0 sm:$0xff]  ;;  %v826_v6 = vld [vmem:[%s2389_s7 + $0x8] sm:$0xff]  ;;  %s1187_s24 = sshll.u32 %s547_s5, 4  ;;  %s2337_s24 = int_to_ptr.vmem [resolvable:$true] %s1187_s24 }
  0xd3   : > { %v553_v8 = vld [vmem:[%s552_s16] sm:$0xff]  ;;  %v554_v16 = vld [vmem:[%s552_s16 + $0x8] sm:$0xff]  ;;  %s2434_s28 = sld [smem:[#allocation28_spill]]  ;;  %s1175_s15 = scalar_lea.sflag [#allocation4], %s546_s21 }
  0xd4   : > { %1407 = vmatprep.mubr.msk.f32.mxu0 %vm565_vm0, %v553_v8  ;;  %1475 = vmatprep.subr.bf16.mxu1 %v1474_v34  ;;  %v1334_v46 = vld [vmem:[#allocation2] ss:$0 sm:$0xff]  ;;  %v827_v8 = vld [vmem:[%s2389_s7 + $0x10] sm:$0xff]  ;;  %s1829_s27 = scalar_lea.vmem %s2337_s24, 16  ;;  %p2435_p7 = scmp.ne.s32.totalorder %s2433_s19, 0 }
  0xd5   : > { %1461 = vmatpush3.bf16.msra.mxu0 %v1458_v5  ;;  %1477 = vmatpush3.bf16.msra.mxu1 %v1474_v34  ;;  %v825_v5 = vld [vmem:[%s2389_s7] sm:$0xff]  ;;  %p1830_p4 = scmp.ne.s32.totalorder %s2337_s24, %s1829_s27  ;;  %s1919_s17 = smov [#allocation14]  }
  0xd6   : > { %1463 = vmatprep.subr.bf16.mxu0 %v1462_v9  ;;  %1479 = vmatprep.subr.bf16.mxu1 %v1478_v36  ;;  %v1482_v7 = vpack.c.bf16 %v826_v6, %v825_v5  ;;  %s1833_s18 = sshll.u32 %s1919_s17, 4  ;;  %s1834_s18 = int_to_ptr.vmem [resolvable:$false] %s1833_s18 }
  0xd7   : > { %p1831_p8 = pnand %p1830_p4, %p2435_p7  ;;  %s1835_s14 = scalar_lea.vmem %s1834_s18, 32 }
  0xd8   : > { %p1836_p13 = scmp.lt.s32.totalorder %s2337_s24, %s1834_s18  ;;  %p1837_p1 = scmp.lt.s32.totalorder %s1835_s14, %s1829_s27 }
  0xd9   : > { %1465 = vmatpush3.bf16.msra.mxu0 %v1462_v9  ;;  %1481 = vmatpush3.bf16.msra.mxu1 %v1478_v36  ;;  %v828_v9 = vld [vmem:[%s2389_s7 + $0x18] sm:$0xff]  ;;  %s2342_s29 = scalar_lea.hbm %s2434_s28, %s1348_s26  ;;  %p1832_p11 = pneg %p1831_p8 }
  0xda   : > { %1467 = vmatprep.subr.bf16.mxu0 %v1466_v12  ;;  %v1486_v10 = vpack.c.bf16 %v828_v9, %v827_v8  ;;  %1483 = vmatprep.subr.bf16.mxu1 %v1482_v7  ;;  %p1838_p0 = por %p1837_p1, %p1836_p13 }
  0xdc   : > { %p1839_p6 = pnand %p1838_p0, %p1832_p11 }
  0xdd   : > { %1469 = vmatpush3.bf16.msra.mxu0 %v1466_v12 }
  0xde   : > { %1471 = vmatprep.subr.bf16.mxu0 %v1470_v15 }
  0xe1   : > { %1473 = vmatpush3.bf16.msra.mxu0 %v1470_v15 }
  0xe4   : > { %1408 = vmatmul.mubr.msk.f32.vlgmr.msra.gmra.mrb[0].mxu0 %vm565_vm0, %v554_v16 }
 0x1b7   : > { %v1409_v17 = vpop.f32.mrb[0].mxu0 }
 0x1b8   : > { %v638_v18 = vpop.f32.mrb[1].mxu0  ;;  %v653_v20 = vsel %vm649_vm1, %v1409_v17, 0.0 }
 0x1b9   : > { %v650_v19 = vsel %vm649_vm1, %v638_v18, 0.0 }
 0x1ba   : > { %651 = vadd.xlane.f32.xlu0 %v650_v19 }
 0x1be   : > { %654 = vadd.xlane.f32.xlu0 %v653_v20 }
 0x247   : > { %v652_v21 = vpop.xlane.xlu0 %651 }
 0x248   : > { %v656_v22 = vmul.f32 0.03125, %v652_v21  ;;  %v1338_v21 = vld [vmem:[#allocation7] ss:$0 sm:$0xff] }
 0x24a   : > { %v658_v23 = vsub.f32 %v638_v18, %v656_v22  ;;  %v1337_v18 = vld [vmem:[#allocation5] ss:$0 sm:$0xff] }
 0x24b   : > { %v655_v24 = vpop.xlane.xlu0 %654 }
 0x24c   : > { %v657_v25 = vmul.f32 0.03125, %v655_v24  ;;  %v660_v26 = vmul.f32 %v658_v23, %v658_v23 }
 0x24e   : > { %v659_v27 = vsub.f32 %v1409_v17, %v657_v25  ;;  %v662_v28 = vsel %vm649_vm1, %v660_v26, 0.0 }
 0x24f   : > { %663 = vadd.xlane.f32.xlu1 %v662_v28 }
 0x250   : > { %v661_v29 = vmul.f32 %v659_v27, %v659_v27 }
 0x252   : > { %v665_v30 = vsel %vm649_vm1, %v661_v29, 0.0 }
 0x253   : > { %666 = vadd.xlane.f32.xlu1 %v665_v30 }
 0x2dc   : > { %v664_v37 = vpop.xlane.xlu1 %663 }
 0x2dd   : > { %v668_v38 = vmul.f32 0.03125, %v664_v37 }
 0x2df   : > { %v670_v39 = vadd.f32 1e-05, %v668_v38 }
 0x2e0   : > { %v667_v40 = vpop.xlane.xlu1 %666 }
 0x2e1   : > { %1617 = vrsqrt.f32 %v670_v39  ;;  %v669_v41 = vmul.f32 0.03125, %v667_v40 }
 0x2e3   : > { %v671_v42 = vadd.f32 1e-05, %v669_v41 }
 0x2e5   : > { %1619 = vrsqrt.f32 %v671_v42 }
 0x2eb   : > { %v1618_v43 = vpop.eup %1617 }
 0x2ec   : > { %v674_v45 = vmul.f32 %v1618_v43, %v658_v23  ;;  %v956_v43 = vld [vmem:[%s2392_s10] sm:$0xff] }
 0x2ee   : > { %v682_v47 = vmul.f32 %v1333_v44, %v674_v45 }
 0x2ef   : > { %v1620_v48 = vpop.eup %1619 }
 0x2f0   : > { %v675_v49 = vmul.f32 %v1620_v48, %v659_v27  ;;  %v690_v50 = vadd.f32 %v1334_v46, %v682_v47  ;;  %v959_v47 = vld [vmem:[%s2392_s10 + $0x18] sm:$0xff] }
 0x2f2   : > { %v683_v51 = vmul.f32 %v1333_v44, %v675_v49  ;;  %v692_v52 = vmax.f32 %v690_v50, 0.0  ;;  %v957_v44 = vld [vmem:[%s2392_s10 + $0x8] sm:$0xff] }
 0x2f3   : > { %v1490_v45 = vpack.c.bf16 %v957_v44, %v956_v43 }
 0x2f4   : > { %v691_v53 = vadd.f32 %v1334_v46, %v683_v51  ;;  %1418 = vmatprep.mubr.msk.f32.mxu1 %vm649_vm1, %v692_v52  ;;  %v958_v46 = vld [vmem:[%s2392_s10 + $0x10] sm:$0xff] }
 0x2f5   : > { %v1494_v48 = vpack.c.bf16 %v959_v47, %v958_v46 }
 0x2f6   : > { %v693_v54 = vmax.f32 %v691_v53, 0.0 }
 0x2f8   : > { %1419 = vmatmul.mubr.msk.f32.vlgmr.msra.gmra.mrb[0].mxu1 %vm649_vm1, %v693_v54 }
 0x2f9   : > { %1485 = vmatpush3.bf16.msra.mxu1 %v1482_v7 }
 0x2fa   : > { %1487 = vmatprep.subr.bf16.mxu1 %v1486_v10 }
 0x2fd   : > { %1489 = vmatpush3.bf16.msra.mxu1 %v1486_v10 }
 0x2fe   : > { %1491 = vmatprep.subr.bf16.mxu1 %v1490_v45 }
 0x3cb   : > { %v1420_v55 = vpop.f32.mrb[0].mxu1 }
 0x3cc   : > { %v770_v56 = vpop.f32.mrb[1].mxu1  ;;  %v784_v57 = vsel %vm649_vm1, %v1420_v55, 0.0 }
 0x3cd   : > { %785 = vadd.xlane.f32.xlu1 %v784_v57  ;;  %v781_v58 = vsel %vm649_vm1, %v770_v56, 0.0 }
 0x3ce   : > { %782 = vadd.xlane.f32.xlu0 %v781_v58 }
 0x45a   : > { %v786_v59 = vpop.xlane.xlu1 %785 }
 0x45b   : > { %v788_v60 = vmul.f32 0.03125, %v786_v59  ;;  %v783_v61 = vpop.xlane.xlu0 %782  ;;  %v1342_v59 = vld [vmem:[#allocation10] ss:$0 sm:$0xff] }
 0x45c   : > { %v787_v62 = vmul.f32 0.03125, %v783_v61 }
 0x45d   : > { %v790_v63 = vsub.f32 %v1420_v55, %v788_v60 }
 0x45e   : > { %v789_v0 = vsub.f32 %v770_v56, %v787_v62  ;;  %v1341_v56 = vld [vmem:[#allocation8] ss:$0 sm:$0xff] }
 0x45f   : > { %v792_v1 = vmul.f32 %v790_v63, %v790_v63 }
 0x460   : > { %v791_v2 = vmul.f32 %v789_v0, %v789_v0 }
 0x461   : > { %v796_v3 = vsel %vm649_vm1, %v792_v1, 0.0 }
 0x462   : > { %797 = vadd.xlane.f32.xlu1 %v796_v3  ;;  %v793_v4 = vsel %vm649_vm1, %v791_v2, 0.0 }
 0x463   : > { %794 = vadd.xlane.f32.xlu0 %v793_v4 }
 0x4ef   : > { %v798_v11 = vpop.xlane.xlu1 %797 }
 0x4f0   : > { %v800_v12 = vmul.f32 0.03125, %v798_v11  ;;  %v795_v13 = vpop.xlane.xlu0 %794 }
 0x4f1   : > { %v799_v14 = vmul.f32 0.03125, %v795_v13 }
 0x4f2   : > { %v802_v15 = vadd.f32 1e-05, %v800_v12 }
 0x4f3   : > { %v801_v16 = vadd.f32 1e-05, %v799_v14 }
 0x4f4   : > { %1621 = vrsqrt.f32 %v802_v15 }
 0x4f5   : > { %1623 = vrsqrt.f32 %v801_v16 }
 0x4fe   : > { %v1622_v17 = vpop.eup %1621 }
 0x4ff   : > { %v1624_v19 = vpop.eup %1623  ;;  %v806_v20 = vmul.f32 %v1622_v17, %v790_v63  ;;  %v1096_v17 = vld [vmem:[%s2395_s13] sm:$0xff] }
 0x500   : > { %v805_v22 = vmul.f32 %v1624_v19, %v789_v0  ;;  %v1098_v19 = vld [vmem:[%s2395_s13 + $0x10] sm:$0xff] }
 0x501   : > { %v814_v23 = vmul.f32 %v1337_v18, %v806_v20  ;;  %v1916_v20 = vmov 0.0|0.0  }
 0x502   : > { %v813_v24 = vmul.f32 %v1337_v18, %v805_v22  ;;  %v1097_v18 = vld [vmem:[%s2395_s13 + $0x8] sm:$0xff]  ;;  %1498 = vmatprep.subr.bf16.mxu0 %v1916_v20  ;;  %v1099_v22 = vld [vmem:[%s2395_s13 + $0x18] sm:$0xff] }
 0x503   : > { %v822_v25 = vadd.f32 %v1338_v21, %v814_v23  ;;  %v1918_v23 = vmov 0.0  }
 0x504   : > { %v821_v26 = vadd.f32 %v1338_v21, %v813_v24  ;;  %v1499_v21 = vpack.c.bf16 %v1097_v18, %v1096_v17  ;;  %1451 = vmatprep.mubr.msk.f32.mxu0 %vm1917_vm2, %v1918_v23  ;;  %v1502_v24 = vpack.c.bf16 %v1099_v22, %v1098_v19 }
 0x505   : > { %v824_v28 = vmax.f32 %v822_v25, 0.0 }
 0x506   : > { %v823_v27 = vmax.f32 %v821_v26, 0.0  ;;  %1500 = vmatpush3.bf16.msra.mxu0 %v1499_v21 }
 0x507   : > { %1501 = vmatprep.subr.bf16.mxu0 %v1916_v20 }
 0x508   : > { %1429 = vmatprep.mubr.msk.f32.mxu1 %vm649_vm1, %v823_v27 }
 0x509   : > { %1430 = vmatmul.mubr.msk.f32.vlgmr.msra.gmra.mrb[2].mxu1 %vm649_vm1, %v824_v28 }
 0x50a   : > { %1493 = vmatpush3.bf16.msra.mxu1 %v1490_v45  ;;  %1503 = vmatpush3.bf16.msra.mxu0 %v1502_v24 }
 0x50b   : > { %1495 = vmatprep.subr.bf16.mxu1 %v1494_v48 }
 0x50e   : > { %1497 = vmatpush3.bf16.msra.mxu1 %v1494_v48 }
 0x5dc   : > { %v1431_v29 = vpop.f32.mrb[2].mxu1 }
 0x5dd   : > { %v901_v30 = vpop.f32.mrb[3].mxu1  ;;  %v915_v31 = vsel %vm649_vm1, %v1431_v29, 0.0 }
 0x5de   : > { %916 = vadd.xlane.f32.xlu1 %v915_v31  ;;  %v912_v32 = vsel %vm649_vm1, %v901_v30, 0.0 }
 0x5df   : > { %913 = vadd.xlane.f32.xlu0 %v912_v32  ;;  %v1345_v32 = vld [vmem:[#allocation11] ss:$0 sm:$0xff] }
 0x66b   : > { %v917_v33 = vpop.xlane.xlu1 %916 }
 0x66c   : > { %v919_v34 = vmul.f32 0.03125, %v917_v33  ;;  %v914_v35 = vpop.xlane.xlu0 %913 }
 0x66d   : > { %v918_v36 = vmul.f32 0.03125, %v914_v35  ;;  %v1346_v35 = vld [vmem:[#allocation13] ss:$0 sm:$0xff] }
 0x66e   : > { %v921_v37 = vsub.f32 %v1431_v29, %v919_v34 }
 0x66f   : > { %v920_v38 = vsub.f32 %v901_v30, %v918_v36 }
 0x670   : > { %v923_v39 = vmul.f32 %v921_v37, %v921_v37 }
 0x671   : > { %v922_v40 = vmul.f32 %v920_v38, %v920_v38 }
 0x672   : > { %v927_v41 = vsel %vm649_vm1, %v923_v39, 0.0 }
 0x673   : > { %928 = vadd.xlane.f32.xlu1 %v927_v41  ;;  %v924_v42 = vsel %vm649_vm1, %v922_v40, 0.0 }
 0x674   : > { %925 = vadd.xlane.f32.xlu0 %v924_v42 }
 0x700   : > { %v929_v49 = vpop.xlane.xlu1 %928 }
 0x701   : > { %v931_v50 = vmul.f32 0.03125, %v929_v49  ;;  %v926_v51 = vpop.xlane.xlu0 %925 }
 0x702   : > { %v930_v52 = vmul.f32 0.03125, %v926_v51 }
 0x703   : > { %v933_v53 = vadd.f32 1e-05, %v931_v50 }
 0x704   : > { %v932_v54 = vadd.f32 1e-05, %v930_v52 }
 0x705   : > { %1625 = vrsqrt.f32 %v933_v53 }
 0x706   : > { %1627 = vrsqrt.f32 %v932_v54 }
 0x70f   : > { %v1626_v55 = vpop.eup %1625 }
 0x710   : > { %v1628_v57 = vpop.eup %1627  ;;  %v937_v58 = vmul.f32 %v1626_v55, %v921_v37 }
 0x711   : > { %v936_v60 = vmul.f32 %v1628_v57, %v920_v38 }
 0x712   : > { %v945_v61 = vmul.f32 %v1341_v56, %v937_v58 }
 0x713   : > { %v944_v62 = vmul.f32 %v1341_v56, %v936_v60 }
 0x714   : > { %v953_v63 = vadd.f32 %v1342_v59, %v945_v61 }
 0x715   : > { %v952_v0 = vadd.f32 %v1342_v59, %v944_v62 }
 0x716   : > { %v955_v2 = vmax.f32 %v953_v63, 0.0 }
 0x717   : > { %v954_v1 = vmax.f32 %v952_v0, 0.0 }
 0x719   : > { %1440 = vmatprep.mubr.msk.f32.mxu1 %vm649_vm1, %v954_v1 }
 0x71a   : > { %1441 = vmatmul.mubr.msk.f32.vlgmr.msra.gmra.mrb[4].mxu1 %vm649_vm1, %v955_v2 }
 0x7ed   : > { %v1442_v3 = vpop.f32.mrb[4].mxu1 }
 0x7ee   : > { %v1032_v4 = vpop.f32.mrb[5].mxu1  ;;  %v1046_v5 = vsel %vm649_vm1, %v1442_v3, 0.0 }
 0x7ef   : > { %1047 = vadd.xlane.f32.xlu1 %v1046_v5  ;;  %v1043_v6 = vsel %vm649_vm1, %v1032_v4, 0.0 }
 0x7f0   : > { %1044 = vadd.xlane.f32.xlu0 %v1043_v6 }
 0x87c   : > { %v1048_v7 = vpop.xlane.xlu1 %1047 }
 0x87d   : > { %v1050_v8 = vmul.f32 0.03125, %v1048_v7  ;;  %v1045_v9 = vpop.xlane.xlu0 %1044 }
 0x87e   : > { %v1049_v10 = vmul.f32 0.03125, %v1045_v9 }
 0x87f   : > { %v1052_v11 = vsub.f32 %v1442_v3, %v1050_v8 }
 0x880   : > { %v1051_v12 = vsub.f32 %v1032_v4, %v1049_v10 }
 0x881   : > { %v1054_v13 = vmul.f32 %v1052_v11, %v1052_v11 }
 0x882   : > { %v1053_v14 = vmul.f32 %v1051_v12, %v1051_v12 }
 0x883   : > { %v1058_v15 = vsel %vm649_vm1, %v1054_v13, 0.0 }
 0x884   : > { %1059 = vadd.xlane.f32.xlu1 %v1058_v15  ;;  %v1055_v16 = vsel %vm649_vm1, %v1053_v14, 0.0 }
 0x885   : > { %1056 = vadd.xlane.f32.xlu0 %v1055_v16 }
 0x911   : > { %v1060_v25 = vpop.xlane.xlu1 %1059 }
 0x912   : > { %v1062_v26 = vmul.f32 0.03125, %v1060_v25  ;;  %v1057_v27 = vpop.xlane.xlu0 %1056 }
 0x913   : > { %v1061_v28 = vmul.f32 0.03125, %v1057_v27 }
 0x914   : > { %v1064_v29 = vadd.f32 1e-05, %v1062_v26 }
 0x915   : > { %v1063_v30 = vadd.f32 1e-05, %v1061_v28 }
 0x916   : > { %1629 = vrsqrt.f32 %v1064_v29 }
 0x917   : > { %1631 = vrsqrt.f32 %v1063_v30 }
 0x920   : > { %v1630_v31 = vpop.eup %1629 }
 0x921   : > { %v1632_v33 = vpop.eup %1631  ;;  %v1068_v34 = vmul.f32 %v1630_v31, %v1052_v11 }
 0x922   : > { %v1067_v36 = vmul.f32 %v1632_v33, %v1051_v12 }
 0x923   : > { %v1076_v37 = vmul.f32 %v1345_v32, %v1068_v34 }
 0x924   : > { %v1075_v38 = vmul.f32 %v1345_v32, %v1067_v36 }
 0x925   : > { %v1084_v39 = vadd.f32 %v1346_v35, %v1076_v37 }
 0x926   : > { %v1083_v40 = vadd.f32 %v1346_v35, %v1075_v38 }
 0x927   : > { %v1086_v41 = vmax.f32 %v1084_v39, 0.0 }
 0x928   : > { %v1085_v42 = vmax.f32 %v1083_v40, 0.0 }
 0x929   : > { %v1088_v43 = vsel %vm649_vm1, %v1086_v41, 0.0 }
 0x92a   : > { %v1087_v44 = vsel %vm649_vm1, %v1085_v42, 0.0 }
 0x92b   : > { %v1089_v45 = vadd.f32 %v1088_v43, %v1087_v44 }
 0x92d   : > { %v1090_v46 = vrot.slane %v1089_v45, 4 }
 0x92f   : > { %v1091_v47 = vadd.f32 %v1090_v46, %v1089_v45 }
 0x931   : > { %v1092_v48 = vrot.slane %v1091_v47, 2 }
 0x933   : > { %v1093_v49 = vadd.f32 %v1092_v48, %v1091_v47 }
 0x935   : > { %v1094_v50 = vrot.slane %v1093_v49, 1 }
 0x937   : > { %v1095_v51 = vadd.f32 %v1094_v50, %v1093_v49 }
 0x939   : > { %1452 = vmatmul.mubr.msk.f32.vlgmr.msra.gmra.mrb[2].mxu0 %vm649_vm1, %v1095_v51 }
 0xa0c   : > { %v1169_v52 = vpop.f32.mrb[2].mxu0 }
 0xa0d   : > { %1173 = vst [vmem:[%s547_s5] sm:$0x1] %v1169_v52  ;;  %v1453_v53 = vpop.f32.mrb[3].mxu0 }
 0xa0e   : > { %1842 = shalt.err (!%p1839_p6)
}
 0xa0f   : > { %s1843_s23 = scalar_lea.hbm %s2342_s29, 16  ;;  %s1847_s21 = scalar_lea.hbm %s2434_s28, 32 }
 0xa10   : > { %p1844_p5 = scmp.ne.s32.totalorder %s2342_s29, %s1843_s23  ;;  %p1848_p10 = scmp.lt.u32.totalorder %s2342_s29, %s2434_s28 }
 0xa11   : > { %p1849_p2 = scmp.lt.u32.totalorder %s1847_s21, %s1843_s23  ;;  %p1851_p4 = scmp.lt.u32.totalorder %s1843_s23, %s2342_s29 }
 0xa12   : > { %p1845_p9 = pnand %p1844_p5, %p2435_p7 }
 0xa13   : > { %p1850_p3 = por %p1849_p2, %p1848_p10 }
 0xa14   : > { %p1846_p12 = pneg %p1845_p9 }
 0xa15   : > { %p1852_p8 = por %p1851_p4, %p1850_p3 }
 0xa17   : > { %p1853_p11 = pnand %p1852_p8, %p1846_p12 }
 0xa19   : > { %1856 = shalt.err (!%p1853_p11)
}
 0xa1a   : > { %1532 = dma.vmem_to_hbm [thread:$0]  (%p2435_p7), %s2337_s24, 16, %s2342_s29, %s1175_s15  }
 0xa1b PF: > { %s2436_s25 = sld [smem:[#allocation22_spill]]  ;;  %s2437_s20 = sld [smem:[#allocation20_spill]] }
 0xa1c   : > { %s2438_s27 = sld [smem:[#allocation26_spill]] }
 0xa21   : > { %p1574_p13 = scmp.ge.s32.totalorder %s2436_s25, 2  ;;  %s1199_s17 = sand.u32 1, %s2437_s20  }
 0xa22   : > { %p2439_p1 = scmp.ne.s32.totalorder %s2438_s27, 0  ;;  %s1200_s18 = scalar_lea.sflag [#allocation4], %s1199_s17 }
 0xa24   : > { %p1557_p0 = pnand %p1574_p13, %p2439_p1 }
 0xa26   : > { %1890 = dma.done.wait (!%p1557_p0), %s1200_s18, 16  }
 0xa27   : > { %1892 = vsyncadd (!%p1557_p0), %s1200_s18, 4294967280  ;;  %s2440_s16 = sld [smem:[#allocation23_spill]]  ;;  %s2441_s14 = sld [smem:[#allocation21_spill]] }
 0xa28   : > { %s2442_s15 = sld [smem:[#allocation24_spill]]  ;;  %s2443_s29 = smov %s1899_s30 }
 0xa2d   : > { %p28_p6 = scmp.ge.s32.totalorder %s2440_s16, 4   ;;  %s2444_s30 = smov %s2441_s14 }
 0xa2f   :  { %30 = sbr.rel (!%p28_p6) target bundleno = 10 (0xa), region = 140 }
 0xa36   :  { %1204 = vsyncpa [#allocation3], 1 }
 0xa37   :  { %1206 = vsyncpa [#allocation3 + $0x1], 1 }
 0xa38   :  { %1207 = vsyncpa [#allocation6], 1 }
 0xa39   :  { %1208 = vsyncpa [#allocation9], 1 }
 0xa3a   :  { %1209 = vsyncpa [#allocation12], 1 }
 0xa3b   :  { %1210 = vsyncpa [#allocation4], 1 }
 0xa3c   :  { %1212 = vsyncpa [#allocation4 + $0x1], 1 }

</bundles_post_ra>
